<compile_context>
chip_gen: v7x
topology: tpu7x:2x2x1
jax: 0.10.0
libtpu: 0.0.40
codegen_flags: <defaults>
</compile_context>

<pallas_src>
import jax
import jax.numpy as jnp
from jax.experimental import pallas as pl
from jax.experimental.pallas import tpu as pltpu

IN_DIM = 100
HID_DIM = 100
OUT_DIM = 2
PAD = 128          # lane-padded feature width for the hidden layers / weights
DEFAULT_TB = 1024  # batch tile (multiple of 8 sublanes)


def _round_up(n, m):
    return ((n + m - 1) // m) * m


def _cdiv(a, b):
    return -(-a // b)


def _fcn_kernel(x_ref, w1_ref, b1_ref, w2_ref, b2_ref, w3_ref, b3_ref, o_ref, xpad_ref):
    tb = xpad_ref.shape[0]

    # Lane-pad x from 100 -> 128 inside VMEM.  Pad lanes are re-zeroed every grid step so
    # this stays correct under megacore grid sharding (scratch is per-core) and never
    # depends on undefined data (NaN/Inf garbage * 0 would be NaN).
    xpad_ref[:, IN_DIM:] = jnp.zeros((tb, PAD - IN_DIM), xpad_ref.dtype)
    xpad_ref[:, :IN_DIM] = x_ref[...].astype(jnp.bfloat16)
    x = xpad_ref[...]                                       # (tb, 128) bf16

    # Three GEMMs on the MXU, bf16 operands with f32 accumulation; bias add / ReLU in f32.
    h1 = jnp.dot(x, w1_ref[...], preferred_element_type=jnp.float32) + b1_ref[...]
    h1 = jnp.maximum(h1, 0.0).astype(jnp.bfloat16)

    h2 = jnp.dot(h1, w2_ref[...], preferred_element_type=jnp.float32) + b2_ref[...]
    h2 = jnp.maximum(h2, 0.0).astype(jnp.bfloat16)

    out = jnp.dot(h2, w3_ref[...], preferred_element_type=jnp.float32) + b3_ref[...]

    # Store only the 2 live output columns (a few lane-masked vst's; negligible vs. the
    # 64x HBM writeback saved by the narrow output).
    o_ref[...] = out[:, :OUT_DIM].astype(o_ref.dtype)


def _choose_tb(B, tb_req):
    """Batch tile: multiple of 8 sublanes, capped by the batch, and split so the grid has
    at least 2 steps when the batch allows it (keeps both v7x TCs busy under
    dimension_semantics=("parallel",))."""
    tb = min(tb_req, _round_up(B, 8))
    tb = max(8, (tb // 8) * 8)                 # enforce the (8, 128) sublane rule
    if _round_up(B, 8) >= 16 and _cdiv(B, tb) < 2:
        tb = _round_up(_cdiv(B, 2), 8)
    return tb


def fcn_synthetic_forward(x, packed, *, tb=DEFAULT_TB):
    """x: (B, 100) float32. packed: dict of lane-padded bf16 weights / f32 biases.
    Returns (B, 2) float32, matching the PyTorch module."""
    B = x.shape[0]
    x = x.astype(jnp.float32)

    tb = _choose_tb(B, tb)
    grid = (pl.cdiv(B, tb),)                   # ragged last tile handled by Pallas

    x_spec = pl.BlockSpec((tb, IN_DIM), lambda i: (i, 0))    # raw, unpadded f32 input
    w_spec = pl.BlockSpec((PAD, PAD), lambda i: (0, 0))      # resident across grid steps
    b_spec = pl.BlockSpec((1, PAD), lambda i: (0, 0))        # resident across grid steps
    o_spec = pl.BlockSpec((tb, OUT_DIM), lambda i: (i, 0))   # narrow (B, 2) output

    weight_bytes = 3 * PAD * PAD * 2 + 3 * PAD * 4
    cost = pl.CostEstimate(
        flops=2 * 3 * B * PAD * PAD,
        transcendentals=0,
        bytes_accessed=B * IN_DIM * 4 + B * OUT_DIM * 4 + weight_bytes,
    )

    return pl.pallas_call(
        _fcn_kernel,
        out_shape=jax.ShapeDtypeStruct((B, OUT_DIM), jnp.float32),
        grid=grid,
        in_specs=[x_spec, w_spec, b_spec, w_spec, b_spec, w_spec, b_spec],
        out_specs=o_spec,
        scratch_shapes=[pltpu.VMEM((tb, PAD), jnp.bfloat16)],
        compiler_params=pltpu.CompilerParams(
            dimension_semantics=("parallel",),   # v7x: shard batch tiles across 2 TCs
        ),
        cost_estimate=cost,
    )(
        x,
        packed["w1"], packed["b1"],
        packed["w2"], packed["b2"],
        packed["w3"], packed["b3"],
    )


def init_params(key):
    """Unpadded f32 params mimicking torch.nn.Linear default init
    (U[-1/sqrt(fan_in), 1/sqrt(fan_in)]). Weights stored as (in, out)."""
    k1, k2, k3, k4, k5, k6 = jax.random.split(key, 6)

    def uni(k, shape, fan_in):
        bound = 1.0 / jnp.sqrt(fan_in)
        return jax.random.uniform(k, shape, jnp.float32, -bound, bound)

    return {
        "w1": uni(k1, (IN_DIM, HID_DIM), IN_DIM),
        "b1": uni(k2, (1, HID_DIM), IN_DIM),
        "w2": uni(k3, (HID_DIM, HID_DIM), HID_DIM),
        "b2": uni(k4, (1, HID_DIM), HID_DIM),
        "w3": uni(k5, (HID_DIM, OUT_DIM), HID_DIM),
        "b3": uni(k6, (1, OUT_DIM), HID_DIM),
    }


def pack_params(raw):
    """Lane-pad every layer to 128 wide (zeros) and cast weights to bf16 for the MXU.
    Biases stay f32 (bias add / ReLU run in f32 on the VPU)."""
    def pad_w(w):
        i, o = w.shape
        return jnp.pad(w, ((0, PAD - i), (0, PAD - o))).astype(jnp.bfloat16)

    def pad_b(b):
        return jnp.pad(b, ((0, 0), (0, PAD - b.shape[1]))).astype(jnp.float32)

    return {
        "w1": pad_w(raw["w1"]), "b1": pad_b(raw["b1"]),
        "w2": pad_w(raw["w2"]), "b2": pad_b(raw["b2"]),
        "w3": pad_w(raw["w3"]), "b3": pad_b(raw["b3"]),
    }


def reference_forward(x, raw):
    """Pure-JAX f32 reference (unpadded)."""
    h1 = jnp.maximum(x @ raw["w1"] + raw["b1"], 0.0)
    h2 = jnp.maximum(h1 @ raw["w2"] + raw["b2"], 0.0)
    return h2 @ raw["w3"] + raw["b3"]


if __name__ == "__main__":
    key = jax.random.PRNGKey(0)
    pkey, xkey = jax.random.split(key)

    raw = init_params(pkey)
    packed = pack_params(raw)

    # B=8: single full tile.  B=24: two tiles with a ragged (partial) last tile,
    # exercising the cdiv grid path.
    for B in (8, 24):
        x = jax.random.normal(jax.random.fold_in(xkey, B), (B, IN_DIM), jnp.float32)

        out = jax.block_until_ready(fcn_synthetic_forward(x, packed))
        ref = reference_forward(x, raw)

        assert out.shape == (B, OUT_DIM), out.shape
        # bf16 MXU operands with f32 accumulation -> loosened tolerance vs f32 reference.
        assert jnp.allclose(out, ref, atol=3e-2, rtol=3e-2), (
            f"mismatch vs reference at B={B}; max abs diff = "
            f"{float(jnp.max(jnp.abs(out - ref)))}"
        )

    print("KERNEL_OK")
</pallas_src>

<mosaic_0001>
module attributes {stable_mosaic.version = 11 : i64} {
  func.func @_fcn_kernel(%arg0: i32, %arg1: memref<8x100xf32, #tpu.memory_space<vmem>>, %arg2: memref<128x128xbf16, #tpu.memory_space<vmem>>, %arg3: memref<1x128xf32, #tpu.memory_space<vmem>>, %arg4: memref<128x128xbf16, #tpu.memory_space<vmem>>, %arg5: memref<1x128xf32, #tpu.memory_space<vmem>>, %arg6: memref<128x128xbf16, #tpu.memory_space<vmem>>, %arg7: memref<1x128xf32, #tpu.memory_space<vmem>>, %arg8: memref<8x2xf32, #tpu.memory_space<vmem>>, %arg9: memref<8x128xbf16, #tpu.memory_space<vmem>>) attributes {dimension_semantics = [#tpu.dimension_semantics<parallel>], iteration_bounds = array<i64: 1>, scalar_prefetch = 0 : i64, scratch_operands = 1 : i64, tpu.core_type = #tpu.core_type<tc>, window_params = [{transform_indices = @transform_0, window_bounds = array<i64: 8, 100>}, {pipeline_mode = #tpu.pipeline_mode<synchronous>, transform_indices = @transform_1, window_bounds = array<i64: 128, 128>}, {pipeline_mode = #tpu.pipeline_mode<synchronous>, transform_indices = @transform_2, window_bounds = array<i64: 1, 128>}, {pipeline_mode = #tpu.pipeline_mode<synchronous>, transform_indices = @transform_3, window_bounds = array<i64: 128, 128>}, {pipeline_mode = #tpu.pipeline_mode<synchronous>, transform_indices = @transform_4, window_bounds = array<i64: 1, 128>}, {pipeline_mode = #tpu.pipeline_mode<synchronous>, transform_indices = @transform_5, window_bounds = array<i64: 128, 128>}, {pipeline_mode = #tpu.pipeline_mode<synchronous>, transform_indices = @transform_6, window_bounds = array<i64: 1, 128>}, {transform_indices = @transform_7, window_bounds = array<i64: 8, 2>}]} {
    %cst = arith.constant 0.000000e+00 : bf16
    %0 = vector.broadcast %cst : bf16 to vector<8x28xbf16>
    %c0 = arith.constant 0 : index
    %c100 = arith.constant 100 : index
    %1 = vector.load %arg9[%c0, %c100] : memref<8x128xbf16, #tpu.memory_space<vmem>>, vector<8x28xbf16>
    tpu.vector_store %arg9[%c0, %c100], %0 {strides = array<i32>} : memref<8x128xbf16, #tpu.memory_space<vmem>>, vector<8x28xbf16>,
    %c0_0 = arith.constant 0 : index
    %c0_1 = arith.constant 0 : index
    %2 = vector.load %arg1[%c0_0, %c0_1] : memref<8x100xf32, #tpu.memory_space<vmem>>, vector<8x100xf32>
    %3 = arith.truncf %2 : vector<8x100xf32> to vector<8x100xbf16>
    %c0_2 = arith.constant 0 : index
    %c0_3 = arith.constant 0 : index
    %4 = vector.load %arg9[%c0_2, %c0_3] : memref<8x128xbf16, #tpu.memory_space<vmem>>, vector<8x100xbf16>
    tpu.vector_store %arg9[%c0_2, %c0_3], %3 {strides = array<i32>} : memref<8x128xbf16, #tpu.memory_space<vmem>>, vector<8x100xbf16>,
    %c0_4 = arith.constant 0 : index
    %c0_5 = arith.constant 0 : index
    %5 = vector.load %arg9[%c0_4, %c0_5] : memref<8x128xbf16, #tpu.memory_space<vmem>>, vector<8x128xbf16>
    %c0_6 = arith.constant 0 : index
    %c0_7 = arith.constant 0 : index
    %6 = vector.load %arg2[%c0_6, %c0_7] : memref<128x128xbf16, #tpu.memory_space<vmem>>, vector<128x128xbf16>
    %cst_8 = arith.constant dense<0.000000e+00> : vector<8x128xf32>
    %7 = tpu.matmul %5, %6, %cst_8 {dimension_numbers = #tpu.dot_dimension_numbers<[1], [0], [0], [1], [0, 0, 1, 1], [], []>} : vector<8x128xbf16>, vector<128x128xbf16>, vector<8x128xf32> -> vector<8x128xf32>
    %c0_9 = arith.constant 0 : index
    %c0_10 = arith.constant 0 : index
    %8 = vector.load %arg3[%c0_9, %c0_10] : memref<1x128xf32, #tpu.memory_space<vmem>>, vector<1x128xf32>
    %9 = vector.broadcast %8 : vector<1x128xf32> to vector<8x128xf32>
    %10 = arith.addf %7, %9 : vector<8x128xf32>
    %cst_11 = arith.constant 0.000000e+00 : f32
    %11 = vector.broadcast %cst_11 : f32 to vector<8x128xf32>
    %12 = arith.maximumf %10, %11 : vector<8x128xf32>
    %13 = arith.truncf %12 : vector<8x128xf32> to vector<8x128xbf16>
    %c0_12 = arith.constant 0 : index
    %c0_13 = arith.constant 0 : index
    %14 = vector.load %arg4[%c0_12, %c0_13] : memref<128x128xbf16, #tpu.memory_space<vmem>>, vector<128x128xbf16>
    %cst_14 = arith.constant dense<0.000000e+00> : vector<8x128xf32>
    %15 = tpu.matmul %13, %14, %cst_14 {dimension_numbers = #tpu.dot_dimension_numbers<[1], [0], [0], [1], [0, 0, 1, 1], [], []>} : vector<8x128xbf16>, vector<128x128xbf16>, vector<8x128xf32> -> vector<8x128xf32>
    %c0_15 = arith.constant 0 : index
    %c0_16 = arith.constant 0 : index
    %16 = vector.load %arg5[%c0_15, %c0_16] : memref<1x128xf32, #tpu.memory_space<vmem>>, vector<1x128xf32>
    %17 = vector.broadcast %16 : vector<1x128xf32> to vector<8x128xf32>
    %18 = arith.addf %15, %17 : vector<8x128xf32>
    %cst_17 = arith.constant 0.000000e+00 : f32
    %19 = vector.broadcast %cst_17 : f32 to vector<8x128xf32>
    %20 = arith.maximumf %18, %19 : vector<8x128xf32>
    %21 = arith.truncf %20 : vector<8x128xf32> to vector<8x128xbf16>
    %c0_18 = arith.constant 0 : index
    %c0_19 = arith.constant 0 : index
    %22 = vector.load %arg6[%c0_18, %c0_19] : memref<128x128xbf16, #tpu.memory_space<vmem>>, vector<128x128xbf16>
    %cst_20 = arith.constant dense<0.000000e+00> : vector<8x128xf32>
    %23 = tpu.matmul %21, %22, %cst_20 {dimension_numbers = #tpu.dot_dimension_numbers<[1], [0], [0], [1], [0, 0, 1, 1], [], []>} : vector<8x128xbf16>, vector<128x128xbf16>, vector<8x128xf32> -> vector<8x128xf32>
    %c0_21 = arith.constant 0 : index
    %c0_22 = arith.constant 0 : index
    %24 = vector.load %arg7[%c0_21, %c0_22] : memref<1x128xf32, #tpu.memory_space<vmem>>, vector<1x128xf32>
    %25 = vector.broadcast %24 : vector<1x128xf32> to vector<8x128xf32>
    %26 = arith.addf %23, %25 : vector<8x128xf32>
    %27 = vector.extract_strided_slice %26 {offsets = [0, 0], sizes = [8, 2], strides = [1, 1]} : vector<8x128xf32> to vector<8x2xf32>
    %c0_23 = arith.constant 0 : index
    %c0_24 = arith.constant 0 : index
    %28 = vector.load %arg8[%c0_23, %c0_24] : memref<8x2xf32, #tpu.memory_space<vmem>>, vector<8x2xf32>
    tpu.vector_store %arg8[%c0_23, %c0_24], %27 {strides = array<i32>} : memref<8x2xf32, #tpu.memory_space<vmem>>, vector<8x2xf32>,
    return
  }
  func.func @transform_0(%arg0: i32) -> (i32, i32) {
    %c0_i32 = arith.constant 0 : i32
    %c0_i32_0 = arith.constant 0 : i32
    return %arg0, %c0_i32 : i32, i32
  }
  func.func @transform_1(%arg0: i32) -> (i32, i32) {
    %c0_i32 = arith.constant 0 : i32
    %c0_i32_0 = arith.constant 0 : i32
    %c0_i32_1 = arith.constant 0 : i32
    return %c0_i32, %c0_i32_0 : i32, i32
  }
  func.func @transform_2(%arg0: i32) -> (i32, i32) {
    %c0_i32 = arith.constant 0 : i32
    %c0_i32_0 = arith.constant 0 : i32
    %c0_i32_1 = arith.constant 0 : i32
    return %c0_i32, %c0_i32_0 : i32, i32
  }
  func.func @transform_3(%arg0: i32) -> (i32, i32) {
    %c0_i32 = arith.constant 0 : i32
    %c0_i32_0 = arith.constant 0 : i32
    %c0_i32_1 = arith.constant 0 : i32
    return %c0_i32, %c0_i32_0 : i32, i32
  }
  func.func @transform_4(%arg0: i32) -> (i32, i32) {
    %c0_i32 = arith.constant 0 : i32
    %c0_i32_0 = arith.constant 0 : i32
    %c0_i32_1 = arith.constant 0 : i32
    return %c0_i32, %c0_i32_0 : i32, i32
  }
  func.func @transform_5(%arg0: i32) -> (i32, i32) {
    %c0_i32 = arith.constant 0 : i32
    %c0_i32_0 = arith.constant 0 : i32
    %c0_i32_1 = arith.constant 0 : i32
    return %c0_i32, %c0_i32_0 : i32, i32
  }
  func.func @transform_6(%arg0: i32) -> (i32, i32) {
    %c0_i32 = arith.constant 0 : i32
    %c0_i32_0 = arith.constant 0 : i32
    %c0_i32_1 = arith.constant 0 : i32
    return %c0_i32, %c0_i32_0 : i32, i32
  }
  func.func @transform_7(%arg0: i32) -> (i32, i32) {
    %c0_i32 = arith.constant 0 : i32
    %c0_i32_0 = arith.constant 0 : i32
    return %arg0, %c0_i32 : i32, i32
  }
}

</mosaic_0001>

<bundles_post_ra>
// kernel: tpu_custom_call.1
= control target key start
LH: loop header
LB: loop body
LE: loop exit
PB: predicated region body
PF: predicated region fallthrough
CT: control target
= control target key end

     0   :  { %12 = vsyncpa [#allocation4], 0  ;;  %s822_s0 = inlined_call_operand.hbm [shape: f32[8,100], index: 0, kind: input, shape index: {}]   ;;  %s823_s1 = inlined_call_operand.hbm [shape: bf16[128,128], index: 1, kind: input, shape index: {}]   ;;  %s824_s2 = inlined_call_operand.vmem [shape: f32[1,128], index: 2, kind: input, shape index: {}]   ;;  %s825_s3 = inlined_call_operand.hbm [shape: bf16[128,128], index: 3, kind: input, shape index: {}]   ;;  %s826_s4 = inlined_call_operand.vmem [shape: f32[1,128], index: 4, kind: input, shape index: {}]   ;;  %s827_s5 = inlined_call_operand.hbm [shape: bf16[128,128], index: 5, kind: input, shape index: {}]   ;;  %s828_s6 = inlined_call_operand.vmem [shape: f32[1,128], index: 6, kind: input, shape index: {}]   ;;  %s829_s7 = inlined_call_operand.vmem [shape: f32[8,2], index: 7, kind: output, shape index: {}]  }
   0x1   :  { %13 = vsyncpa [#allocation6], 0 }
   0x2   :  { %14 = vsyncpa [#allocation9], 0  ;;  %s674_s24 = smov [#allocation5]   ;;  %s580_s28 = scalar_lea.hbm %s823_s1, 1024 }
   0x3   :  { %s30_s25 = sshll.u32 %s674_s24, 4  ;;  %p581_p0 = scmp.ne.s32.totalorder %s823_s1, %s580_s28  ;;  %s31_s25 = int_to_ptr.vmem [resolvable:$true] %s30_s25 }
   0x4   :  { %p584_p1 = scmp.lt.u32.totalorder %s580_s28, %s823_s1 }
   0x6   :  { %p586_p2 = pnand %p584_p1, %p581_p0 }
   0x8   :  { %589 = shalt.err (!%p586_p2)
}
   0x9   :  { %s590_s10 = scalar_lea.vmem %s31_s25, 1024  ;;  %p595_p4 = scmp.lt.s32.totalorder %s31_s25, %s31_s25 }
   0xa   :  { %p591_p3 = scmp.ne.s32.totalorder %s31_s25, %s590_s10  ;;  %p596_p5 = scmp.lt.s32.totalorder %s590_s10, %s590_s10 }
   0xc   :  { %p597_p6 = por %p596_p5, %p595_p4 }
   0xe   :  { %p598_p7 = pnand %p597_p6, %p591_p3 }
  0x10   :  { %601 = shalt.err (!%p598_p7)
}
  0x11   :  { %s675_s11 = smov 64   ;;  %s676_s12 = smov 4  }
  0x12   :  { %36 = dma.hbm_to_vmem [thread:$0]  %s823_s1, 1024, %s31_s25, [#allocation6], %s675_s11, %s675_s11, %s676_s12  }
  0x13   :  { %s677_s15 = smov [#allocation3]   ;;  %s678_s17 = smov [#allocation7]  }
  0x14   :  { %s21_s16 = sshll.u32 %s677_s15, 4  ;;  %s44_s18 = sshll.u32 %s678_s17, 4  ;;  %s22_s16 = int_to_ptr.vmem [resolvable:$true] %s21_s16  ;;  %s45_s18 = int_to_ptr.vmem [resolvable:$true] %s44_s18 }
  0x15   :  { %s602_s21 = scalar_lea.hbm %s822_s0, 128 }
  0x16   :  { %p603_p8 = scmp.ne.s32.totalorder %s822_s0, %s602_s21  ;;  %p606_p9 = scmp.lt.u32.totalorder %s602_s21, %s822_s0 }
  0x18   :  { %p608_p10 = pnand %p606_p9, %p603_p8 }
  0x1a   :  { %611 = shalt.err (!%p608_p10)
}
  0x1b   :  { %s612_s1 = scalar_lea.vmem %s22_s16, 128  ;;  %p617_p12 = scmp.lt.s32.totalorder %s22_s16, %s22_s16 }
  0x1c   :  { %p613_p11 = scmp.ne.s32.totalorder %s22_s16, %s612_s1  ;;  %p618_p13 = scmp.lt.s32.totalorder %s612_s1, %s612_s1 }
  0x1e   :  { %p619_p0 = por %p618_p13, %p617_p12 }
  0x20   :  { %p620_p1 = pnand %p619_p0, %p613_p11 }
  0x22   :  { %623 = shalt.err (!%p620_p1)
}
  0x23   :  { %24 = dma.hbm_to_vmem [thread:$0]  %s822_s0, 128, %s22_s16, [#allocation4]  }
  0x24   :  { %s624_s30 = scalar_lea.hbm %s825_s3, 1024 }
  0x25   :  { %p625_p2 = scmp.ne.s32.totalorder %s825_s3, %s624_s30  ;;  %p628_p3 = scmp.lt.u32.totalorder %s624_s30, %s825_s3 }
  0x27   :  { %p630_p4 = pnand %p628_p3, %p625_p2 }
  0x29   :  { %633 = shalt.err (!%p630_p4)
}
  0x2a   :  { %s634_s14 = scalar_lea.vmem %s45_s18, 1024  ;;  %p639_p6 = scmp.lt.s32.totalorder %s45_s18, %s45_s18 }
  0x2b   :  { %p635_p5 = scmp.ne.s32.totalorder %s45_s18, %s634_s14  ;;  %p640_p7 = scmp.lt.s32.totalorder %s634_s14, %s634_s14 }
  0x2d   :  { %p641_p8 = por %p640_p7, %p639_p6 }
  0x2f   :  { %p642_p9 = pnand %p641_p8, %p635_p5 }
  0x31   :  { %645 = shalt.err (!%p642_p9)
}
  0x32   :  { %50 = dma.hbm_to_vmem [thread:$0]  %s825_s3, 1024, %s45_s18, [#allocation6], %s675_s11, %s675_s11, %s676_s12  }
  0x33   :  { %s679_s16 = smov [#allocation8]   ;;  %s646_s21 = scalar_lea.hbm %s827_s5, 1024 }
  0x34   :  { %s58_s17 = sshll.u32 %s679_s16, 4  ;;  %p647_p10 = scmp.ne.s32.totalorder %s827_s5, %s646_s21  ;;  %s59_s17 = int_to_ptr.vmem [resolvable:$true] %s58_s17 }
  0x35   :  { %p650_p11 = scmp.lt.u32.totalorder %s646_s21, %s827_s5 }
  0x37   :  { %p652_p12 = pnand %p650_p11, %p647_p10 }
  0x39   :  { %655 = shalt.err (!%p652_p12)
}
  0x3a   :  { %s656_s1 = scalar_lea.vmem %s59_s17, 1024  ;;  %p661_p0 = scmp.lt.s32.totalorder %s59_s17, %s59_s17 }
  0x3b   :  { %p657_p13 = scmp.ne.s32.totalorder %s59_s17, %s656_s1  ;;  %p662_p1 = scmp.lt.s32.totalorder %s656_s1, %s656_s1 }
  0x3d   :  { %p663_p2 = por %p662_p1, %p661_p0 }
  0x3f   :  { %p664_p3 = pnand %p663_p2, %p657_p13 }
  0x41   :  { %667 = shalt.err (!%p664_p3)
}
  0x42   :  { %64 = dma.hbm_to_vmem [thread:$0]  %s827_s5, 1024, %s59_s17, [#allocation9], %s675_s11, %s675_s11, %s676_s12  }
  0x43   :  { %668 = dma.done.wait [#allocation4], 128  }
  0x44   :  { %669 = vsyncadd [#allocation4], 4294967168 }
  0x45   :  { %670 = dma.done.wait [#allocation6], 2048  }
  0x46   :  { %671 = vsyncadd [#allocation6], 4294965248 }
  0x47   :  { %672 = dma.done.wait [#allocation9], 1024  }
  0x48   :  { %673 = vsyncadd [#allocation9], 4294966272  ;;  %vm80_vm0 = vcmask 1044256   ;;  %v680_v0 = vmov 0.0   ;;  %vm681_vm1 = vmmov 0   ;;  %v682_v1 = vmov 0  }
  0x49   :  { %487 = vmatprep.subr.bf16.mxu0 %v680_v0  ;;  %503 = vmatprep.mubr.msk.bf16.mxu0 %vm681_vm1, %v680_v0  ;;  %81 = vst.msk [vmem:[#allocation2] sm:$0xf] %vm80_vm0, %v682_v1  ;;  %v556_v2 = vld [vmem:[#allocation5] sm:$0xff]   ;;  %v557_v3 = vld [vmem:[#allocation5 + $0x8] sm:$0xff]   ;;  %v558_v4 = vld [vmem:[#allocation5 + $0x10] sm:$0xff]   ;;  %vm84_vm2 = vcmask 814080  }
  0x4a   :  { %507 = vmatprep.subr.bf16.mxu1 %v680_v0  ;;  %523 = vmatprep.mubr.msk.bf16.mxu1 %vm681_vm1, %v680_v0  ;;  %v82_v5 = vld [vmem:[#allocation3] sm:$0xff]  ;;  %v564_v7 = vld [vmem:[#allocation7] sm:$0xff]   ;;  %v565_v9 = vld [vmem:[#allocation7 + $0x8] sm:$0xff]   ;;  %vm424_vm3 = vcmask 15360  }
  0x4b   :  { %488 = vmatpush3.bf16.msra.mxu0 %v556_v2  ;;  %v83_v6 = vpack.c.bf16 %v82_v5, %v82_v5  ;;  %v559_v8 = vld [vmem:[#allocation5 + $0x18] sm:$0xff]   ;;  %508 = vmatpush3.bf16.msra.mxu1 %v564_v7  ;;  %v560_v10 = vld [vmem:[#allocation5 + $0x20] sm:$0xff]   ;;  %v566_v11 = vld [vmem:[#allocation7 + $0x10] sm:$0xff]  }
  0x4c   :  { %489 = vmatprep.subr.bf16.mxu0 %v680_v0  ;;  %509 = vmatprep.subr.bf16.mxu1 %v680_v0  ;;  %v561_v12 = vld [vmem:[#allocation5 + $0x28] sm:$0xff]   ;;  %v567_v13 = vld [vmem:[#allocation7 + $0x18] sm:$0xff]   ;;  %v562_v14 = vld [vmem:[#allocation5 + $0x30] sm:$0xff]  }
  0x4d   :  { %85 = vst.msk [vmem:[#allocation2] sm:$0xf] %vm84_vm2, %v83_v6  ;;  %v568_v15 = vld [vmem:[#allocation7 + $0x20] sm:$0xff]   ;;  %v563_v16 = vld [vmem:[#allocation5 + $0x38] sm:$0xff]   ;;  %v569_v17 = vld [vmem:[#allocation7 + $0x28] sm:$0xff]  }
  0x4e   :  { %v570_v19 = vld [vmem:[#allocation7 + $0x30] sm:$0xff]   ;;  %v571_v20 = vld [vmem:[#allocation7 + $0x38] sm:$0xff]   ;;  %v572_v21 = vld [vmem:[#allocation8] sm:$0xff]  }
  0x4f   :  { %490 = vmatpush3.bf16.msra.mxu0 %v557_v3  ;;  %510 = vmatpush3.bf16.msra.mxu1 %v565_v9  ;;  %v573_v22 = vld [vmem:[#allocation8 + $0x8] sm:$0xff]   ;;  %v574_v23 = vld [vmem:[#allocation8 + $0x10] sm:$0xff]   ;;  %v575_v24 = vld [vmem:[#allocation8 + $0x18] sm:$0xff]  }
  0x50   :  { %491 = vmatprep.subr.bf16.mxu0 %v680_v0  ;;  %511 = vmatprep.subr.bf16.mxu1 %v680_v0  ;;  %v576_v25 = vld [vmem:[#allocation8 + $0x20] sm:$0xff]   ;;  %v577_v26 = vld [vmem:[#allocation8 + $0x28] sm:$0xff]   ;;  %v433_v27 = vld [vmem:[%s824_s2] ss:$0 sm:$0xff] }
  0x51   :  { %v578_v35 = vld [vmem:[#allocation8 + $0x30] sm:$0xff]   ;;  %v579_v36 = vld [vmem:[#allocation8 + $0x38] sm:$0xff]  }
  0x52   :  { %v442_v37 = vld [vmem:[%s826_s4] ss:$0 sm:$0xff] }
  0x53   :  { %492 = vmatpush3.bf16.msra.mxu0 %v558_v4  ;;  %512 = vmatpush3.bf16.msra.mxu1 %v566_v11  ;;  %v451_v45 = vld [vmem:[%s828_s6] ss:$0 sm:$0xff] }
  0x54   :  { %493 = vmatprep.subr.bf16.mxu0 %v680_v0  ;;  %513 = vmatprep.subr.bf16.mxu1 %v680_v0  ;;  %v86_v18 = vld [vmem:[#allocation2] sm:$0xf] }
  0x57   :  { %494 = vmatpush3.bf16.msra.mxu0 %v559_v8  ;;  %514 = vmatpush3.bf16.msra.mxu1 %v567_v13 }
  0x58   :  { %495 = vmatprep.subr.bf16.mxu0 %v680_v0  ;;  %515 = vmatprep.subr.bf16.mxu1 %v680_v0 }
  0x5b   :  { %496 = vmatpush3.bf16.msra.mxu0 %v560_v10  ;;  %516 = vmatpush3.bf16.msra.mxu1 %v568_v15 }
  0x5c   :  { %497 = vmatprep.subr.bf16.mxu0 %v680_v0  ;;  %517 = vmatprep.subr.bf16.mxu1 %v680_v0 }
  0x5f   :  { %498 = vmatpush3.bf16.msra.mxu0 %v561_v12  ;;  %518 = vmatpush3.bf16.msra.mxu1 %v569_v17 }
  0x60   :  { %499 = vmatprep.subr.bf16.mxu0 %v680_v0  ;;  %519 = vmatprep.subr.bf16.mxu1 %v680_v0 }
  0x63   :  { %500 = vmatpush3.bf16.msra.mxu0 %v562_v14  ;;  %520 = vmatpush3.bf16.msra.mxu1 %v570_v19 }
  0x64   :  { %501 = vmatprep.subr.bf16.mxu0 %v680_v0  ;;  %521 = vmatprep.subr.bf16.mxu1 %v680_v0 }
  0x67   :  { %502 = vmatpush3.bf16.msra.mxu0 %v563_v16  ;;  %522 = vmatpush3.bf16.msra.mxu1 %v571_v20 }
  0x68   :  { %527 = vmatprep.subr.bf16.mxu0 %v680_v0 }
  0x6a   :  { %504 = vmatmul.mubr.bf16.vlgmr.msra.gmra.mrb[0].mxu0 %v86_v18 }
  0x6b   :  { %543 = vmatprep.mubr.msk.bf16.mxu0 %vm681_vm1, %v680_v0  ;;  %528 = vmatpush3.bf16.msra.mxu0 %v572_v21 }
  0x6c   :  { %529 = vmatprep.subr.bf16.mxu0 %v680_v0 }
  0x6f   :  { %530 = vmatpush3.bf16.msra.mxu0 %v573_v22 }
  0x70   :  { %531 = vmatprep.subr.bf16.mxu0 %v680_v0 }
  0x73   :  { %532 = vmatpush3.bf16.msra.mxu0 %v574_v23 }
  0x74   :  { %533 = vmatprep.subr.bf16.mxu0 %v680_v0 }
  0x77   :  { %534 = vmatpush3.bf16.msra.mxu0 %v575_v24 }
  0x78   :  { %535 = vmatprep.subr.bf16.mxu0 %v680_v0 }
  0x7b   :  { %536 = vmatpush3.bf16.msra.mxu0 %v576_v25 }
  0x7c   :  { %537 = vmatprep.subr.bf16.mxu0 %v680_v0 }
  0x7f   :  { %538 = vmatpush3.bf16.msra.mxu0 %v577_v26 }
  0x80   :  { %539 = vmatprep.subr.bf16.mxu0 %v680_v0 }
  0x83   :  { %540 = vmatpush3.bf16.msra.mxu0 %v578_v35 }
  0x84   :  { %541 = vmatprep.subr.bf16.mxu0 %v680_v0 }
  0x87   :  { %542 = vmatpush3.bf16.msra.mxu0 %v579_v36 }
 0x13d   :  { %v192_v28 = vpop.f32.mrb[0].mxu0 }
 0x13e   :  { %v193_v29 = vadd.f32 %v433_v27, %v192_v28  ;;  %v505_v30 = vpop.f32.mrb[1].mxu0 }
 0x13f   :  { %v195_v31 = vpop.f32.mrb[2].mxu0 }
 0x140   :  { %v198_v32 = vmax.f32 %v193_v29, 0.0  ;;  %v506_v33 = vpop.f32.mrb[3].mxu0 }
 0x142   :  { %v199_v34 = vpack.c.bf16 %v198_v32, %v198_v32 }
 0x144   :  { %524 = vmatmul.mubr.bf16.vlgmr.msra.gmra.mrb[0].mxu1 %v199_v34 }
 0x217   :  { %v305_v38 = vpop.f32.mrb[0].mxu1 }
 0x218   :  { %v306_v39 = vadd.f32 %v442_v37, %v305_v38  ;;  %v525_v40 = vpop.f32.mrb[1].mxu1 }
 0x219   :  { %v308_v41 = vpop.f32.mrb[2].mxu1 }
 0x21a   :  { %v311_v42 = vmax.f32 %v306_v39, 0.0  ;;  %v526_v43 = vpop.f32.mrb[3].mxu1 }
 0x21c   :  { %v312_v44 = vpack.c.bf16 %v311_v42, %v311_v42 }
 0x21e   :  { %544 = vmatmul.mubr.bf16.vlgmr.msra.gmra.mrb[4].mxu0 %v312_v44 }
 0x2f1   :  { %v418_v46 = vpop.f32.mrb[4].mxu0 }
 0x2f2   :  { %v419_v47 = vadd.f32 %v451_v45, %v418_v46  ;;  %v545_v48 = vpop.f32.mrb[5].mxu0 }
 0x2f3   :  { %v421_v49 = vpop.f32.mrb[6].mxu0 }
 0x2f4   :  { %425 = vst.msk [vmem:[%s829_s7] sm:$0xff] %vm424_vm3, %v419_v47  ;;  %v546_v50 = vpop.f32.mrb[7].mxu0 }
 0x2f5   :  { %430 = vsyncpa [#allocation4], 1 }
 0x2f6   :  { %431 = vsyncpa [#allocation6], 1 }
 0x2f7   :  { %432 = vsyncpa [#allocation9], 1 }

</bundles_post_ra>
